<compile_context>
chip_gen: v7x
topology: tpu7x:2x2x1
jax: 0.10.0
libtpu: 0.0.40
codegen_flags: <defaults>
</compile_context>

<pallas_src>
import math

import numpy as np
import jax
import jax.numpy as jnp
from jax.experimental import pallas as pl
from jax.experimental.pallas import tpu as pltpu


def _mhsa_kernel(x_ref, wq_ref, bq_ref, wk_ref, bk_ref, wv_ref, bv_ref,
                 gsum_ref, ssum_ref, gspread_ref, wo_ref, bo_ref, o_ref):
    """One row-tile of tokens: all heavy work on the MXU, softmax lane-dense."""
    x = x_ref[...]                                               # (Tm, D)

    # Q/K/V projections, already laid out per (i, j) head pair: (Tm, P).
    q_rep = jnp.dot(x, wq_ref[...], preferred_element_type=jnp.float32) + bq_ref[...]
    k_rep = jnp.dot(x, wk_ref[...], preferred_element_type=jnp.float32) + bk_ref[...]
    v_rep = jnp.dot(x, wv_ref[...], preferred_element_type=jnp.float32) + bv_ref[...]

    # scores[t, i*H + j] = <q_i[t], k_j[t]> / sqrt(d_k): elementwise product,
    # then reduce each d_k group on the MXU (scale folded into gsum).
    scores = jnp.dot(q_rep * k_rep, gsum_ref[...],
                     preferred_element_type=jnp.float32)         # (Tm, H*H)

    # Softmax over j within each group i.  Subtracting the per-row max over all
    # H*H entries is a constant shift inside every group, so the result equals
    # a per-group max subtraction and stays numerically stable.
    m = jnp.max(scores, axis=-1, keepdims=True)                  # (Tm, 1)
    e = jnp.exp(scores - m)                                      # (Tm, H*H)
    den = jnp.dot(e, ssum_ref[...],
                  preferred_element_type=jnp.float32)            # group sums, spread
    attn = e * pl.reciprocal(den, approx=True)                   # (Tm, H*H)

    # Spread attn back over the d_k lanes, weight V, and apply the folded
    # output projection as ONE full-width matmul (the sum over j is part of the
    # (P, D) contraction because W_out rows repeat per j).
    attn_full = jnp.dot(attn, gspread_ref[...],
                        preferred_element_type=jnp.float32)      # (Tm, P)
    out = jnp.dot(attn_full * v_rep, wo_ref[...],
                  preferred_element_type=jnp.float32) + bo_ref[...]   # (Tm, D)
    o_ref[...] = out.astype(o_ref.dtype)


def mhsa_forward(x, wqkv, bqkv, wout, bout, *, num_heads, row_tile=512):
    """x: (B, S, D); wqkv: (D, 3D); bqkv: (1, 3D); wout: (D, D); bout: (1, D)."""
    B, S, D = x.shape
    H = num_heads
    d_k = D // H
    HH = H * H
    P = HH * d_k                       # = H * D  (128 for the demo shape)
    N = B * S

    # ---- one-time, load-time constant folding (outside the kernel) ----------
    def pair_index(fn):
        return np.array([fn(i, j, d)
                         for i in range(H) for j in range(H) for d in range(d_k)],
                        dtype=np.int32)

    q_cols = pair_index(lambda i, j, d: i * 3 * d_k + d)             # q of head i
    k_cols = pair_index(lambda i, j, d: j * 3 * d_k + d_k + d)       # k of head j
    v_cols = pair_index(lambda i, j, d: j * 3 * d_k + 2 * d_k + d)   # v of head j
    o_rows = pair_index(lambda i, j, d: i * d_k + d)                 # W_out rows

    wq, bq = wqkv[:, q_cols], bqkv[:, q_cols]     # (D, P), (1, P)
    wk, bk = wqkv[:, k_cols], bqkv[:, k_cols]
    wv, bv = wqkv[:, v_cols], bqkv[:, v_cols]
    wo = wout[o_rows, :]                          # (P, D)   rows repeated per j

    scale = 1.0 / math.sqrt(d_k)
    # (P, H*H): sums each d_k group on the MXU -> scaled scores.
    gsum = jnp.asarray(np.kron(np.eye(HH), np.ones((d_k, 1))) * scale,
                       dtype=jnp.float32)
    # (H*H, H*H): block-diagonal ones -> softmax denominator spread over j.
    ssum = jnp.asarray(np.kron(np.eye(H), np.ones((H, H))), dtype=jnp.float32)
    # (H*H, P): spreads attn weights back over the d_k lanes.
    gspread = jnp.asarray(np.kron(np.eye(HH), np.ones((1, d_k))),
                          dtype=jnp.float32)

    # ---- flatten (B, S) into rows and tile them ------------------------------
    x2 = x.reshape(N, D)
    tm = N if N <= row_tile else row_tile        # row_tile is a multiple of 8
    grid = (pl.cdiv(N, tm),)

    def full2d(a):
        return pl.BlockSpec(a.shape, lambda r: (0, 0))   # resident, fetched once

    # TODO(synk): for large d_model, raise vmem_limit_bytes and add a column
    # tiling grid axis over the projection weights (v7x has only 64 MiB VMEM).
    out2 = pl.pallas_call(
        _mhsa_kernel,
        out_shape=jax.ShapeDtypeStruct((N, D), x.dtype),
        grid=grid,
        in_specs=[
            pl.BlockSpec((tm, D), lambda r: (r, 0)),     # x row tile
            full2d(wq), full2d(bq),
            full2d(wk), full2d(bk),
            full2d(wv), full2d(bv),
            full2d(gsum), full2d(ssum), full2d(gspread),
            full2d(wo), full2d(bout),
        ],
        out_specs=pl.BlockSpec((tm, D), lambda r: (r, 0)),
        compiler_params=pltpu.CompilerParams(
            dimension_semantics=("parallel",),
        ),
    )(x2, wq, bq, wk, bk, wv, bv, gsum, ssum, gspread, wo, bout)

    return out2.reshape(B, S, D)


def mhsa_reference(x, wqkv, bqkv, wout, bout, *, num_heads):
    """Pure-JAX replica of the PyTorch forward (for verification)."""
    B, S, D = x.shape
    d_k = D // num_heads
    qkv = x @ wqkv + bqkv                                        # (B, S, 3D)
    qkv = qkv.reshape(B, S, num_heads, 3 * d_k)
    q, k, v = qkv[..., :d_k], qkv[..., d_k:2 * d_k], qkv[..., 2 * d_k:]
    scores = jnp.einsum('bshd,bsgd->bshg', q, k) / math.sqrt(d_k)
    attn = jax.nn.softmax(scores, axis=-1)
    ctx = jnp.einsum('bshg,bsgd->bshd', attn, v).reshape(B, S, D)
    return ctx @ wout + bout


if __name__ == "__main__":
    batch, seq, d_model, num_heads = 2, 8, 32, 4

    key = jax.random.PRNGKey(0)
    kx, kw1, kb1, kw2, kb2 = jax.random.split(key, 5)

    x = jax.random.normal(kx, (batch, seq, d_model), dtype=jnp.float32)
    # Parameters stored as (in, out): y = x @ W + b  (== torch x @ W_t.T + b).
    wqkv = 0.1 * jax.random.normal(kw1, (d_model, 3 * d_model), dtype=jnp.float32)
    bqkv = 0.1 * jax.random.normal(kb1, (1, 3 * d_model), dtype=jnp.float32)
    wout = 0.1 * jax.random.normal(kw2, (d_model, d_model), dtype=jnp.float32)
    bout = 0.1 * jax.random.normal(kb2, (1, d_model), dtype=jnp.float32)

    out = mhsa_forward(x, wqkv, bqkv, wout, bout, num_heads=num_heads)
    out = jax.block_until_ready(out)

    ref = mhsa_reference(x, wqkv, bqkv, wout, bout, num_heads=num_heads)
    assert out.shape == (batch, seq, d_model)
    # Slightly looser tolerance because the softmax denominator uses the EUP's
    # approximate reciprocal (pl.reciprocal(..., approx=True)).
    err = float(jnp.max(jnp.abs(out - ref)))
    assert jnp.allclose(out, ref, atol=5e-3, rtol=5e-3), err

    print("KERNEL_OK")
</pallas_src>

<mosaic_0001>
module attributes {stable_mosaic.version = 11 : i64} {
  func.func @_mhsa_kernel(%arg0: i32, %arg1: memref<16x32xf32, #tpu.memory_space<vmem>>, %arg2: memref<32x128xf32, #tpu.memory_space<vmem>>, %arg3: memref<1x128xf32, #tpu.memory_space<vmem>>, %arg4: memref<32x128xf32, #tpu.memory_space<vmem>>, %arg5: memref<1x128xf32, #tpu.memory_space<vmem>>, %arg6: memref<32x128xf32, #tpu.memory_space<vmem>>, %arg7: memref<1x128xf32, #tpu.memory_space<vmem>>, %arg8: memref<128x16xf32, #tpu.memory_space<vmem>>, %arg9: memref<16x16xf32, #tpu.memory_space<vmem>>, %arg10: memref<16x128xf32, #tpu.memory_space<vmem>>, %arg11: memref<128x32xf32, #tpu.memory_space<vmem>>, %arg12: memref<1x32xf32, #tpu.memory_space<vmem>>, %arg13: memref<16x32xf32, #tpu.memory_space<vmem>>) attributes {dimension_semantics = [#tpu.dimension_semantics<parallel>], iteration_bounds = array<i64: 1>, scalar_prefetch = 0 : i64, scratch_operands = 0 : i64, tpu.core_type = #tpu.core_type<tc>, window_params = [{transform_indices = @transform_0, window_bounds = array<i64: 16, 32>}, {pipeline_mode = #tpu.pipeline_mode<synchronous>, transform_indices = @transform_1, window_bounds = array<i64: 32, 128>}, {pipeline_mode = #tpu.pipeline_mode<synchronous>, transform_indices = @transform_2, window_bounds = array<i64: 1, 128>}, {pipeline_mode = #tpu.pipeline_mode<synchronous>, transform_indices = @transform_3, window_bounds = array<i64: 32, 128>}, {pipeline_mode = #tpu.pipeline_mode<synchronous>, transform_indices = @transform_4, window_bounds = array<i64: 1, 128>}, {pipeline_mode = #tpu.pipeline_mode<synchronous>, transform_indices = @transform_5, window_bounds = array<i64: 32, 128>}, {pipeline_mode = #tpu.pipeline_mode<synchronous>, transform_indices = @transform_6, window_bounds = array<i64: 1, 128>}, {pipeline_mode = #tpu.pipeline_mode<synchronous>, transform_indices = @transform_7, window_bounds = array<i64: 128, 16>}, {pipeline_mode = #tpu.pipeline_mode<synchronous>, transform_indices = @transform_8, window_bounds = array<i64: 16, 16>}, {pipeline_mode = #tpu.pipeline_mode<synchronous>, transform_indices = @transform_9, window_bounds = array<i64: 16, 128>}, {pipeline_mode = #tpu.pipeline_mode<synchronous>, transform_indices = @transform_10, window_bounds = array<i64: 128, 32>}, {pipeline_mode = #tpu.pipeline_mode<synchronous>, transform_indices = @transform_11, window_bounds = array<i64: 1, 32>}, {transform_indices = @transform_12, window_bounds = array<i64: 16, 32>}]} {
    %c0 = arith.constant 0 : index
    %c0_0 = arith.constant 0 : index
    %0 = vector.load %arg1[%c0, %c0_0] : memref<16x32xf32, #tpu.memory_space<vmem>>, vector<16x32xf32>
    %c0_1 = arith.constant 0 : index
    %c0_2 = arith.constant 0 : index
    %1 = vector.load %arg2[%c0_1, %c0_2] : memref<32x128xf32, #tpu.memory_space<vmem>>, vector<32x128xf32>
    %cst = arith.constant dense<0.000000e+00> : vector<16x128xf32>
    %2 = tpu.matmul %0, %1, %cst {dimension_numbers = #tpu.dot_dimension_numbers<[1], [0], [0], [1], [0, 0, 1, 1], [], []>} : vector<16x32xf32>, vector<32x128xf32>, vector<16x128xf32> -> vector<16x128xf32>
    %c0_3 = arith.constant 0 : index
    %c0_4 = arith.constant 0 : index
    %3 = vector.load %arg3[%c0_3, %c0_4] : memref<1x128xf32, #tpu.memory_space<vmem>>, vector<1x128xf32>
    %4 = vector.broadcast %3 : vector<1x128xf32> to vector<16x128xf32>
    %5 = arith.addf %2, %4 : vector<16x128xf32>
    %c0_5 = arith.constant 0 : index
    %c0_6 = arith.constant 0 : index
    %6 = vector.load %arg4[%c0_5, %c0_6] : memref<32x128xf32, #tpu.memory_space<vmem>>, vector<32x128xf32>
    %cst_7 = arith.constant dense<0.000000e+00> : vector<16x128xf32>
    %7 = tpu.matmul %0, %6, %cst_7 {dimension_numbers = #tpu.dot_dimension_numbers<[1], [0], [0], [1], [0, 0, 1, 1], [], []>} : vector<16x32xf32>, vector<32x128xf32>, vector<16x128xf32> -> vector<16x128xf32>
    %c0_8 = arith.constant 0 : index
    %c0_9 = arith.constant 0 : index
    %8 = vector.load %arg5[%c0_8, %c0_9] : memref<1x128xf32, #tpu.memory_space<vmem>>, vector<1x128xf32>
    %9 = vector.broadcast %8 : vector<1x128xf32> to vector<16x128xf32>
    %10 = arith.addf %7, %9 : vector<16x128xf32>
    %c0_10 = arith.constant 0 : index
    %c0_11 = arith.constant 0 : index
    %11 = vector.load %arg6[%c0_10, %c0_11] : memref<32x128xf32, #tpu.memory_space<vmem>>, vector<32x128xf32>
    %cst_12 = arith.constant dense<0.000000e+00> : vector<16x128xf32>
    %12 = tpu.matmul %0, %11, %cst_12 {dimension_numbers = #tpu.dot_dimension_numbers<[1], [0], [0], [1], [0, 0, 1, 1], [], []>} : vector<16x32xf32>, vector<32x128xf32>, vector<16x128xf32> -> vector<16x128xf32>
    %c0_13 = arith.constant 0 : index
    %c0_14 = arith.constant 0 : index
    %13 = vector.load %arg7[%c0_13, %c0_14] : memref<1x128xf32, #tpu.memory_space<vmem>>, vector<1x128xf32>
    %14 = vector.broadcast %13 : vector<1x128xf32> to vector<16x128xf32>
    %15 = arith.addf %12, %14 : vector<16x128xf32>
    %16 = arith.mulf %5, %10 : vector<16x128xf32>
    %c0_15 = arith.constant 0 : index
    %c0_16 = arith.constant 0 : index
    %17 = vector.load %arg8[%c0_15, %c0_16] : memref<128x16xf32, #tpu.memory_space<vmem>>, vector<128x16xf32>
    %cst_17 = arith.constant dense<0.000000e+00> : vector<16x16xf32>
    %18 = tpu.matmul %16, %17, %cst_17 {dimension_numbers = #tpu.dot_dimension_numbers<[1], [0], [0], [1], [0, 0, 1, 1], [], []>} : vector<16x128xf32>, vector<128x16xf32>, vector<16x16xf32> -> vector<16x16xf32>
    %cst_18 = arith.constant dense<0xFF800000> : vector<16xf32>
    %19 = vector.multi_reduction <maximumf>, %18, %cst_18 [1] : vector<16x16xf32> to vector<16xf32>
    %20 = vector.shape_cast %19 : vector<16xf32> to vector<16x1xf32>
    %21 = vector.broadcast %20 : vector<16x1xf32> to vector<16x16xf32>
    %22 = arith.subf %18, %21 : vector<16x16xf32>
    %23 = math.exp %22 : vector<16x16xf32>
    %c0_19 = arith.constant 0 : index
    %c0_20 = arith.constant 0 : index
    %24 = vector.load %arg9[%c0_19, %c0_20] : memref<16x16xf32, #tpu.memory_space<vmem>>, vector<16x16xf32>
    %cst_21 = arith.constant dense<0.000000e+00> : vector<16x16xf32>
    %25 = tpu.matmul %23, %24, %cst_21 {dimension_numbers = #tpu.dot_dimension_numbers<[1], [0], [0], [1], [0, 0, 1, 1], [], []>} : vector<16x16xf32>, vector<16x16xf32>, vector<16x16xf32> -> vector<16x16xf32>
    %26 = tpu.reciprocal %25 {approx = true} : vector<16x16xf32> -> vector<16x16xf32>
    %27 = arith.mulf %23, %26 : vector<16x16xf32>
    %c0_22 = arith.constant 0 : index
    %c0_23 = arith.constant 0 : index
    %28 = vector.load %arg10[%c0_22, %c0_23] : memref<16x128xf32, #tpu.memory_space<vmem>>, vector<16x128xf32>
    %cst_24 = arith.constant dense<0.000000e+00> : vector<16x128xf32>
    %29 = tpu.matmul %27, %28, %cst_24 {dimension_numbers = #tpu.dot_dimension_numbers<[1], [0], [0], [1], [0, 0, 1, 1], [], []>} : vector<16x16xf32>, vector<16x128xf32>, vector<16x128xf32> -> vector<16x128xf32>
    %30 = arith.mulf %29, %15 : vector<16x128xf32>
    %c0_25 = arith.constant 0 : index
    %c0_26 = arith.constant 0 : index
    %31 = vector.load %arg11[%c0_25, %c0_26] : memref<128x32xf32, #tpu.memory_space<vmem>>, vector<128x32xf32>
    %cst_27 = arith.constant dense<0.000000e+00> : vector<16x32xf32>
    %32 = tpu.matmul %30, %31, %cst_27 {dimension_numbers = #tpu.dot_dimension_numbers<[1], [0], [0], [1], [0, 0, 1, 1], [], []>} : vector<16x128xf32>, vector<128x32xf32>, vector<16x32xf32> -> vector<16x32xf32>
    %c0_28 = arith.constant 0 : index
    %c0_29 = arith.constant 0 : index
    %33 = vector.load %arg12[%c0_28, %c0_29] : memref<1x32xf32, #tpu.memory_space<vmem>>, vector<1x32xf32>
    %34 = vector.broadcast %33 : vector<1x32xf32> to vector<16x32xf32>
    %35 = arith.addf %32, %34 : vector<16x32xf32>
    %c0_30 = arith.constant 0 : index
    %c0_31 = arith.constant 0 : index
    %36 = vector.load %arg13[%c0_30, %c0_31] : memref<16x32xf32, #tpu.memory_space<vmem>>, vector<16x32xf32>
    tpu.vector_store %arg13[%c0_30, %c0_31], %35 {strides = array<i32>} : memref<16x32xf32, #tpu.memory_space<vmem>>, vector<16x32xf32>,
    return
  }
  func.func @transform_0(%arg0: i32) -> (i32, i32) {
    %c0_i32 = arith.constant 0 : i32
    %c0_i32_0 = arith.constant 0 : i32
    return %arg0, %c0_i32 : i32, i32
  }
  func.func @transform_1(%arg0: i32) -> (i32, i32) {
    %c0_i32 = arith.constant 0 : i32
    %c0_i32_0 = arith.constant 0 : i32
    %c0_i32_1 = arith.constant 0 : i32
    return %c0_i32, %c0_i32_0 : i32, i32
  }
  func.func @transform_2(%arg0: i32) -> (i32, i32) {
    %c0_i32 = arith.constant 0 : i32
    %c0_i32_0 = arith.constant 0 : i32
    %c0_i32_1 = arith.constant 0 : i32
    return %c0_i32, %c0_i32_0 : i32, i32
  }
  func.func @transform_3(%arg0: i32) -> (i32, i32) {
    %c0_i32 = arith.constant 0 : i32
    %c0_i32_0 = arith.constant 0 : i32
    %c0_i32_1 = arith.constant 0 : i32
    return %c0_i32, %c0_i32_0 : i32, i32
  }
  func.func @transform_4(%arg0: i32) -> (i32, i32) {
    %c0_i32 = arith.constant 0 : i32
    %c0_i32_0 = arith.constant 0 : i32
    %c0_i32_1 = arith.constant 0 : i32
    return %c0_i32, %c0_i32_0 : i32, i32
  }
  func.func @transform_5(%arg0: i32) -> (i32, i32) {
    %c0_i32 = arith.constant 0 : i32
    %c0_i32_0 = arith.constant 0 : i32
    %c0_i32_1 = arith.constant 0 : i32
    return %c0_i32, %c0_i32_0 : i32, i32
  }
  func.func @transform_6(%arg0: i32) -> (i32, i32) {
    %c0_i32 = arith.constant 0 : i32
    %c0_i32_0 = arith.constant 0 : i32
    %c0_i32_1 = arith.constant 0 : i32
    return %c0_i32, %c0_i32_0 : i32, i32
  }
  func.func @transform_7(%arg0: i32) -> (i32, i32) {
    %c0_i32 = arith.constant 0 : i32
    %c0_i32_0 = arith.constant 0 : i32
    %c0_i32_1 = arith.constant 0 : i32
    return %c0_i32, %c0_i32_0 : i32, i32
  }
  func.func @transform_8(%arg0: i32) -> (i32, i32) {
    %c0_i32 = arith.constant 0 : i32
    %c0_i32_0 = arith.constant 0 : i32
    %c0_i32_1 = arith.constant 0 : i32
    return %c0_i32, %c0_i32_0 : i32, i32
  }
  func.func @transform_9(%arg0: i32) -> (i32, i32) {
    %c0_i32 = arith.constant 0 : i32
    %c0_i32_0 = arith.constant 0 : i32
    %c0_i32_1 = arith.constant 0 : i32
    return %c0_i32, %c0_i32_0 : i32, i32
  }
  func.func @transform_10(%arg0: i32) -> (i32, i32) {
    %c0_i32 = arith.constant 0 : i32
    %c0_i32_0 = arith.constant 0 : i32
    %c0_i32_1 = arith.constant 0 : i32
    return %c0_i32, %c0_i32_0 : i32, i32
  }
  func.func @transform_11(%arg0: i32) -> (i32, i32) {
    %c0_i32 = arith.constant 0 : i32
    %c0_i32_0 = arith.constant 0 : i32
    %c0_i32_1 = arith.constant 0 : i32
    return %c0_i32, %c0_i32_0 : i32, i32
  }
  func.func @transform_12(%arg0: i32) -> (i32, i32) {
    %c0_i32 = arith.constant 0 : i32
    %c0_i32_0 = arith.constant 0 : i32
    return %arg0, %c0_i32 : i32, i32
  }
}

</mosaic_0001>

<bundles_post_ra>
// kernel: tpu_custom_call.1
= control target key start
LH: loop header
LB: loop body
LE: loop exit
PB: predicated region body
PF: predicated region fallthrough
CT: control target
= control target key end

     0   :  { %vm55_vm0 = vcmask 261120   ;;  %s1288_s0 = inlined_call_operand.vmem [shape: f32[16,32], index: 0, kind: input, shape index: {}]   ;;  %s1289_s1 = inlined_call_operand.vmem [shape: f32[32,128], index: 1, kind: input, shape index: {}]   ;;  %s1290_s2 = inlined_call_operand.vmem [shape: f32[1,128], index: 2, kind: input, shape index: {}]   ;;  %s1291_s3 = inlined_call_operand.vmem [shape: f32[32,128], index: 3, kind: input, shape index: {}]   ;;  %s1292_s4 = inlined_call_operand.vmem [shape: f32[1,128], index: 4, kind: input, shape index: {}]   ;;  %s1293_s5 = inlined_call_operand.vmem [shape: f32[32,128], index: 5, kind: input, shape index: {}]   ;;  %s1294_s6 = inlined_call_operand.vmem [shape: f32[1,128], index: 6, kind: input, shape index: {}]   ;;  %s1295_s7 = inlined_call_operand.vmem [shape: f32[128,16], index: 7, kind: input, shape index: {}]   ;;  %s1296_s8 = inlined_call_operand.vmem [shape: f32[16,16], index: 8, kind: input, shape index: {}]   ;;  %s1297_s9 = inlined_call_operand.vmem [shape: f32[16,128], index: 9, kind: input, shape index: {}]   ;;  %s1298_s10 = inlined_call_operand.vmem [shape: f32[128,32], index: 10, kind: input, shape index: {}]   ;;  %s1299_s11 = inlined_call_operand.vmem [shape: f32[1,32], index: 11, kind: input, shape index: {}]   ;;  %s1300_s12 = inlined_call_operand.hbm [shape: f32[16,32], index: 12, kind: output, shape index: {}]  }
   0x1   :  { %v44_v0 = vld [vmem:[%s1289_s1] sm:$0xff]  ;;  %v45_v1 = vld [vmem:[%s1289_s1 + $0x8] sm:$0xff]  ;;  %v46_v2 = vld [vmem:[%s1289_s1 + $0x10] sm:$0xff] }
   0x2   :  { %v896_v3 = vpack.c.bf16 %v45_v1, %v44_v0  ;;  %v47_v4 = vld [vmem:[%s1289_s1 + $0x18] sm:$0xff]  ;;  %v42_v5 = vld [vmem:[%s1288_s0] sm:$0xff]  ;;  %v138_v8 = vld [vmem:[%s1291_s3 + $0x8] sm:$0xff] }
   0x3   :  { %v900_v6 = vpack.c.bf16 %v47_v4, %v46_v2  ;;  %787 = vmatprep.mubr.msk.f32.mxu1 %vm55_vm0, %v42_v5  ;;  %v137_v7 = vld [vmem:[%s1291_s3] sm:$0xff]  ;;  %809 = vmatprep.mubr.msk.f32.mxu0 %vm55_vm0, %v42_v5  ;;  %v139_v10 = vld [vmem:[%s1291_s3 + $0x10] sm:$0xff]  ;;  %v140_v11 = vld [vmem:[%s1291_s3 + $0x18] sm:$0xff] }
   0x4   :  { %897 = vmatprep.subr.bf16.mxu1 %v896_v3  ;;  %v904_v9 = vpack.c.bf16 %v138_v8, %v137_v7 }
   0x5   :  { %899 = vmatpush3.bf16.msra.mxu1 %v896_v3 }
   0x6   :  { %901 = vmatprep.subr.bf16.mxu1 %v900_v6 }
   0x7   :  { %17 = vsyncpa [#allocation3], 0  ;;  %v1127_v12 = vld [vmem:[%s1288_s0 + $0x8] sm:$0xff]  ;;  %v908_v13 = vpack.c.bf16 %v140_v11, %v139_v10  ;;  %v311_v14 = vld [vmem:[%s1295_s7] sm:$0xff]  ;;  %vm402_vm1 = vcmask 130048  }
   0x8   :  { %v312_v15 = vld [vmem:[%s1295_s7 + $0x8] sm:$0xff]  ;;  %v313_v17 = vld [vmem:[%s1295_s7 + $0x10] sm:$0xff]  ;;  %v314_v18 = vld [vmem:[%s1295_s7 + $0x18] sm:$0xff] }
   0x9   :  { %903 = vmatpush3.bf16.msra.mxu1 %v900_v6  ;;  %v920_v16 = vpack.c.bf16 %v312_v15, %v311_v14  ;;  %v924_v19 = vpack.c.bf16 %v314_v18, %v313_v17  ;;  %v315_v20 = vld [vmem:[%s1295_s7 + $0x20] sm:$0xff]  ;;  %v316_v21 = vld [vmem:[%s1295_s7 + $0x28] sm:$0xff]  ;;  %v317_v23 = vld [vmem:[%s1295_s7 + $0x30] sm:$0xff] }
   0xa   :  { %905 = vmatprep.subr.bf16.mxu1 %v904_v9  ;;  %v928_v22 = vpack.c.bf16 %v316_v21, %v315_v20  ;;  %v318_v24 = vld [vmem:[%s1295_s7 + $0x38] sm:$0xff]  ;;  %v319_v26 = vld [vmem:[%s1295_s7 + $0x40] sm:$0xff]  ;;  %v320_v27 = vld [vmem:[%s1295_s7 + $0x48] sm:$0xff] }
   0xb   :  { %v932_v25 = vpack.c.bf16 %v318_v24, %v317_v23  ;;  %v936_v28 = vpack.c.bf16 %v320_v27, %v319_v26  ;;  %v321_v29 = vld [vmem:[%s1295_s7 + $0x50] sm:$0xff]  ;;  %v322_v30 = vld [vmem:[%s1295_s7 + $0x58] sm:$0xff]  ;;  %v323_v32 = vld [vmem:[%s1295_s7 + $0x60] sm:$0xff] }
   0xc   :  { %788 = vmatmul.mubr.msk.f32.vlgmr.msra.gmra.mrb[0].mxu1 %vm55_vm0, %v1127_v12  ;;  %v940_v31 = vpack.c.bf16 %v322_v30, %v321_v29  ;;  %v324_v33 = vld [vmem:[%s1295_s7 + $0x68] sm:$0xff]  ;;  %v325_v35 = vld [vmem:[%s1295_s7 + $0x70] sm:$0xff]  ;;  %v326_v36 = vld [vmem:[%s1295_s7 + $0x78] sm:$0xff] }
   0xd   :  { %907 = vmatpush3.bf16.msra.mxu1 %v904_v9  ;;  %798 = vmatprep.mubr.msk.f32.mxu1 %vm55_vm0, %v42_v5  ;;  %v944_v34 = vpack.c.bf16 %v324_v33, %v323_v32  ;;  %v948_v37 = vpack.c.bf16 %v326_v36, %v325_v35  ;;  %v703_v40 = vld [vmem:[%s1290_s2] ss:$0 sm:$0xff]  ;;  %v224_v55 = vld [vmem:[%s1293_s5 + $0x8] sm:$0xff]  ;;  %v225_v57 = vld [vmem:[%s1293_s5 + $0x10] sm:$0xff] }
   0xe   :  { %909 = vmatprep.subr.bf16.mxu1 %v908_v13  ;;  %v706_v41 = vld [vmem:[%s1292_s4] ss:$0 sm:$0xff]  ;;  %v226_v58 = vld [vmem:[%s1293_s5 + $0x18] sm:$0xff]  ;;  %v416_v61 = vld [vmem:[%s1296_s8 + $0x8] sm:$0xff] }
   0xf   :  { %v223_v54 = vld [vmem:[%s1293_s5] sm:$0xff]  ;;  %v916_v59 = vpack.c.bf16 %v226_v58, %v225_v57  ;;  %v503_v10 = vld [vmem:[%s1297_s9 + $0x8] sm:$0xff]  ;;  %v589_v18 = vld [vmem:[%s1298_s10 + $0x10] sm:$0xff] }
  0x10   :  { %v912_v56 = vpack.c.bf16 %v224_v55, %v223_v54  ;;  %v415_v60 = vld [vmem:[%s1296_s8] sm:$0xff]  ;;  %v593_v27 = vld [vmem:[%s1298_s10 + $0x30] sm:$0xff] }
  0x11   :  { %911 = vmatpush3.bf16.msra.mxu1 %v908_v13  ;;  %v952_v62 = vpack.c.bf16 %v416_v61, %v415_v60  ;;  %v502_v9 = vld [vmem:[%s1297_s9] sm:$0xff]  ;;  %v588_v13 = vld [vmem:[%s1298_s10 + $0x8] sm:$0xff]  ;;  %v597_v33 = vld [vmem:[%s1298_s10 + $0x50] sm:$0xff] }
  0x12   :  { %921 = vmatprep.subr.bf16.mxu1 %v920_v16  ;;  %913 = vmatprep.subr.bf16.mxu0 %v912_v56  ;;  %v956_v11 = vpack.c.bf16 %v503_v10, %v502_v9  ;;  %v591_v24 = vld [vmem:[%s1298_s10 + $0x20] sm:$0xff] }
  0x13   :  { %915 = vmatpush3.bf16.msra.mxu0 %v912_v56  ;;  %v595_v30 = vld [vmem:[%s1298_s10 + $0x40] sm:$0xff] }
  0x14   :  { %799 = vmatmul.mubr.msk.f32.vlgmr.msra.gmra.mrb[2].mxu1 %vm55_vm0, %v1127_v12  ;;  %917 = vmatprep.subr.bf16.mxu0 %v916_v59  ;;  %v599_v36 = vld [vmem:[%s1298_s10 + $0x60] sm:$0xff] }
  0x15   :  { %923 = vmatpush3.bf16.msra.mxu1 %v920_v16 }
  0x16   :  { %925 = vmatprep.subr.bf16.mxu1 %v924_v19 }
  0x17   :  { %919 = vmatpush3.bf16.msra.mxu0 %v916_v59 }
  0x18   :  { %953 = vmatprep.subr.bf16.mxu0 %v952_v62 }
  0x19   :  { %927 = vmatpush3.bf16.msra.mxu1 %v924_v19  ;;  %v590_v19 = vld [vmem:[%s1298_s10 + $0x18] sm:$0xff] }
  0x1a   :  { %929 = vmatprep.subr.bf16.mxu1 %v928_v22  ;;  %810 = vmatmul.mubr.msk.f32.vlgmr.msra.gmra.mrb[0].mxu0 %vm55_vm0, %v1127_v12  ;;  %v587_v12 = vld [vmem:[%s1298_s10] sm:$0xff]  ;;  %v964_v23 = vpack.c.bf16 %v590_v19, %v589_v18 }
  0x1b   :  { %955 = vmatpush3.bf16.msra.mxu0 %v952_v62  ;;  %v960_v14 = vpack.c.bf16 %v588_v13, %v587_v12 }
  0x1c   :  { %957 = vmatprep.subr.bf16.mxu0 %v956_v11 }
  0x1d   :  { %931 = vmatpush3.bf16.msra.mxu1 %v928_v22 }
  0x1e   :  { %933 = vmatprep.subr.bf16.mxu1 %v932_v25 }
  0x21   :  { %935 = vmatpush3.bf16.msra.mxu1 %v932_v25  ;;  %v592_v25 = vld [vmem:[%s1298_s10 + $0x28] sm:$0xff] }
  0x22   :  { %937 = vmatprep.subr.bf16.mxu1 %v936_v28  ;;  %v968_v26 = vpack.c.bf16 %v592_v25, %v591_v24 }
  0x25   :  { %939 = vmatpush3.bf16.msra.mxu1 %v936_v28  ;;  %v594_v28 = vld [vmem:[%s1298_s10 + $0x38] sm:$0xff] }
  0x26   :  { %941 = vmatprep.subr.bf16.mxu1 %v940_v31  ;;  %v972_v29 = vpack.c.bf16 %v594_v28, %v593_v27 }
  0x29   :  { %943 = vmatpush3.bf16.msra.mxu1 %v940_v31  ;;  %v596_v31 = vld [vmem:[%s1298_s10 + $0x48] sm:$0xff] }
  0x2a   :  { %945 = vmatprep.subr.bf16.mxu1 %v944_v34  ;;  %v976_v32 = vpack.c.bf16 %v596_v31, %v595_v30 }
  0x2d   :  { %947 = vmatpush3.bf16.msra.mxu1 %v944_v34  ;;  %v598_v34 = vld [vmem:[%s1298_s10 + $0x58] sm:$0xff] }
  0x2e   :  { %949 = vmatprep.subr.bf16.mxu1 %v948_v37  ;;  %v980_v35 = vpack.c.bf16 %v598_v34, %v597_v33 }
  0x31   :  { %951 = vmatpush3.bf16.msra.mxu1 %v948_v37  ;;  %v600_v37 = vld [vmem:[%s1298_s10 + $0x68] sm:$0xff] }
  0xdf   :  { %v789_v38 = vpop.f32.mrb[0].mxu1 }
  0xe0   :  { %v128_v39 = vpop.f32.mrb[1].mxu1  ;;  %v134_v43 = vadd.f32 %v789_v38, %v703_v40  ;;  %v984_v38 = vpack.c.bf16 %v600_v37, %v599_v36 }
  0xe1   :  { %v129_v46 = vadd.f32 %v703_v40, %v128_v39  ;;  %v601_v39 = vld [vmem:[%s1298_s10 + $0x70] sm:$0xff]  ;;  %v602_v40 = vld [vmem:[%s1298_s10 + $0x78] sm:$0xff]  ;;  %s1027_s10 = smov [#allocation2]  }
  0xe2   :  { %s692_s15 = sshll.u32 %s1027_s10, 4  ;;  %s693_s15 = int_to_ptr.vmem [resolvable:$true] %s692_s15 }
  0xe3   :  { %p1008_p1 = scmp.lt.s32.totalorder %s693_s15, %s693_s15 }
  0xe7   :  { %v800_v42 = vpop.f32.mrb[2].mxu1 }
  0xe8   :  { %v220_v44 = vadd.f32 %v800_v42, %v706_v41  ;;  %v214_v45 = vpop.f32.mrb[3].mxu1  ;;  %v709_v42 = vld [vmem:[%s1294_s6] ss:$0 sm:$0xff]  ;;  %s1003_s6 = scalar_lea.vmem %s693_s15, 256 }
  0xe9   :  { %v215_v47 = vadd.f32 %v706_v41, %v214_v45  ;;  %v988_v41 = vpack.c.bf16 %v602_v40, %v601_v39  ;;  %p1004_p0 = scmp.ne.s32.totalorder %s693_s15, %s1003_s6  ;;  %p1009_p2 = scmp.lt.s32.totalorder %s1003_s6, %s1003_s6 }
  0xea   :  { %v310_v48 = vmul.f32 %v220_v44, %v134_v43 }
  0xeb   :  { %v309_v49 = vmul.f32 %v215_v47, %v129_v46  ;;  %p1010_p3 = por %p1009_p2, %p1008_p1 }
  0xed   :  { %844 = vmatprep.mubr.f32.mxu1 %v309_v49  ;;  %v811_v7 = vpop.f32.mrb[0].mxu0  ;;  %v716_v49 = vld [vmem:[%s1299_s11] ss:$0 sm:$0xff]  ;;  %p1011_p4 = pnand %p1010_p3, %p1004_p0 }
  0xee   :  { %845 = vmatmul.mubr.f32.vlgmr.msra.gmra.mrb[4].mxu1 %v310_v48  ;;  %v300_v8 = vpop.f32.mrb[1].mxu0  ;;  %v306_v43 = vadd.f32 %v811_v7, %v709_v42 }
  0xef   :  { %v301_v44 = vadd.f32 %v709_v42, %v300_v8 }
 0x1c1   :  { %v846_v50 = vpop.f32.mrb[4].mxu1 }
 0x1c2   :  { %v393_v51 = vpop.f32.mrb[5].mxu1  ;;  %v406_v53 = vsel %vm402_vm1, %v846_v50, -inf }
 0x1c3   :  { %v403_v52 = vsel %vm402_vm1, %v393_v51, -inf }
 0x1c4   :  { %404 = vmax.xlane.f32.xlu0 %v403_v52 }
 0x1c8   :  { %407 = vmax.xlane.f32.xlu0 %v406_v53 }
 0x251   :  { %v405_v63 = vpop.xlane.xlu0 %404 }
 0x252   :  { %v409_v0 = vsub.f32 %v393_v51, %v405_v63 }
 0x254   :  { %v411_v1 = vmul.f32 1.442695, %v409_v0 }
 0x255   :  { %v408_v2 = vpop.xlane.xlu0 %407 }
 0x256   :  { %995 = vpow2.f32 %v411_v1  ;;  %v410_v3 = vsub.f32 %v846_v50, %v408_v2 }
 0x258   :  { %v413_v4 = vmul.f32 1.442695, %v410_v3 }
 0x25a   :  { %997 = vpow2.f32 %v413_v4 }
 0x260   :  { %v996_v5 = vpop.eup %995 }
 0x261   :  { %851 = vmatprep.mubr.msk.f32.mxu0 %vm402_vm1, %v996_v5 }
 0x264   :  { %v998_v6 = vpop.eup %997 }
 0x265   :  { %852 = vmatmul.mubr.msk.f32.vlgmr.msra.gmra.mrb[2].mxu0 %vm402_vm1, %v998_v6 }
 0x266   :  { %959 = vmatpush3.bf16.msra.mxu0 %v956_v11 }
 0x267   :  { %961 = vmatprep.subr.bf16.mxu0 %v960_v14 }
 0x338   :  { %v853_v15 = vpop.f32.mrb[2].mxu0 }
 0x339   :  { %999 = vrcp.f32 %v853_v15  ;;  %v489_v16 = vpop.f32.mrb[3].mxu0 }
 0x33a   :  { %1001 = vrcp.f32 %v489_v16 }
 0x343   :  { %v1000_v17 = vpop.eup %999 }
 0x344   :  { %v1002_v20 = vpop.eup %1001  ;;  %v501_v22 = vmul.f32 %v1000_v17, %v998_v6 }
 0x345   :  { %v500_v21 = vmul.f32 %v1002_v20, %v996_v5 }
 0x347   :  { %858 = vmatprep.mubr.msk.f32.mxu0 %vm402_vm1, %v500_v21 }
 0x348   :  { %859 = vmatmul.mubr.msk.f32.vlgmr.msra.gmra.mrb[4].mxu0 %vm402_vm1, %v501_v22 }
 0x349   :  { %963 = vmatpush3.bf16.msra.mxu0 %v960_v14 }
 0x34a   :  { %965 = vmatprep.subr.bf16.mxu0 %v964_v23 }
 0x34d   :  { %967 = vmatpush3.bf16.msra.mxu0 %v964_v23 }
 0x34e   :  { %969 = vmatprep.subr.bf16.mxu0 %v968_v26 }
 0x351   :  { %971 = vmatpush3.bf16.msra.mxu0 %v968_v26 }
 0x352   :  { %973 = vmatprep.subr.bf16.mxu0 %v972_v29 }
 0x355   :  { %975 = vmatpush3.bf16.msra.mxu0 %v972_v29 }
 0x356   :  { %977 = vmatprep.subr.bf16.mxu0 %v976_v32 }
 0x359   :  { %979 = vmatpush3.bf16.msra.mxu0 %v976_v32 }
 0x35a   :  { %981 = vmatprep.subr.bf16.mxu0 %v980_v35 }
 0x35d   :  { %983 = vmatpush3.bf16.msra.mxu0 %v980_v35 }
 0x35e   :  { %985 = vmatprep.subr.bf16.mxu0 %v984_v38 }
 0x361   :  { %987 = vmatpush3.bf16.msra.mxu0 %v984_v38 }
 0x362   :  { %989 = vmatprep.subr.bf16.mxu0 %v988_v41 }
 0x365   :  { %991 = vmatpush3.bf16.msra.mxu0 %v988_v41 }
 0x41b   :  { %v860_v45 = vpop.f32.mrb[4].mxu0 }
 0x41c   :  { %v586_v46 = vmul.f32 %v860_v45, %v306_v43  ;;  %v576_v47 = vpop.f32.mrb[5].mxu0 }
 0x41d   :  { %v585_v48 = vmul.f32 %v576_v47, %v301_v44 }
 0x41f   :  { %893 = vmatprep.mubr.f32.mxu0 %v585_v48 }
 0x420   :  { %894 = vmatmul.mubr.f32.vlgmr.msra.gmra.mrb[6].mxu0 %v586_v46 }
 0x4f3   :  { %v895_v50 = vpop.f32.mrb[6].mxu0 }
 0x4f4   :  { %v682_v51 = vadd.f32 %v895_v50, %v716_v49  ;;  %v676_v52 = vpop.f32.mrb[7].mxu0 }
 0x4f5   :  { %v677_v53 = vadd.f32 %v716_v49, %v676_v52 }
 0x4f6   :  { %686 = vst.msk [vmem:[#allocation2 + $0x8] sm:$0xff] %vm55_vm0, %v682_v51 }
 0x4f7   :  { %685 = vst.msk [vmem:[#allocation2] sm:$0xff] %vm55_vm0, %v677_v53 }
 0x4f8   :  { %1014 = shalt.err (!%p1011_p4)
}
 0x4f9   :  { %s1015_s2 = scalar_lea.hbm %s1300_s12, 256 }
 0x4fa   :  { %p1016_p5 = scmp.ne.s32.totalorder %s1300_s12, %s1015_s2  ;;  %p1019_p6 = scmp.lt.u32.totalorder %s1015_s2, %s1300_s12 }
 0x4fc   :  { %p1021_p7 = pnand %p1019_p6, %p1016_p5 }
 0x4fe   :  { %1024 = shalt.err (!%p1021_p7)
}
 0x4ff   :  { %s1028_s18 = smov 128   ;;  %s1029_s19 = smov 8  }
 0x500   :  { %698 = dma.vmem_to_hbm [thread:$0]  %s693_s15, 256, %s1300_s12, [#allocation3], %s1028_s18, %s1028_s18, %s1029_s19  }
 0x501   :  { %1025 = dma.done.wait [#allocation3], 256  }
 0x502   :  { %1026 = vsyncadd [#allocation3], 4294967040 }
 0x503   :  { %702 = vsyncpa [#allocation3], 1 }

</bundles_post_ra>
